<compile_context>
chip_gen: v7x
topology: tpu7x:2x2x1
jax: 0.10.0
libtpu: 0.0.40
codegen_flags: <defaults>
</compile_context>

<pallas_src>
import numpy as np
import jax
import jax.numpy as jnp
from jax.experimental import pallas as pl
from jax.experimental.pallas import tpu as pltpu

EPS = 1e-5


def _row_conv_matrices(w_hwio, w_out, in_padded):
    """Fold kx taps + channel contraction of a 3x3 conv into per-ky matrices.

    Returns B of shape (3, Win*Cin, Wout*Cout) such that, for output row y,
      out_row[y] = sum_ky  in_row[y + ky] @ B[ky]
    where in_row is the input row flattened as (x, ci); if in_padded the input
    row has width W+2 (explicit W padding), otherwise the W boundary is handled
    by zero blocks inside B.
    """
    kh, kw, cin, cout = w_hwio.shape
    win = w_out + 2 if in_padded else w_out
    B = np.zeros((kh, win * cin, w_out * cout), np.float32)
    for ky in range(kh):
        for kx in range(kw):
            for xo in range(w_out):
                xi = xo + kx if in_padded else xo + kx - 1
                if 0 <= xi < win:
                    B[ky, xi * cin:(xi + 1) * cin,
                      xo * cout:(xo + 1) * cout] = w_hwio[ky, kx]
    return B


def _channel_allreduce(v, c, wc):
    # v: (1, W*C); lane i belongs to channel i % C.  Roll-butterfly on the XLU
    # so every lane ends up with the sum over its channel group.
    # Requires W = wc // c to be a power of two.
    step = c
    while step < wc:
        v = v + pltpu.roll(v, shift=step, axis=1)
        step *= 2
    return v


def basic_block_kernel(xpad_ref, w1_ref, g1_ref, b1_ref, w2_ref, g2_ref, b2_ref,
                       out_ref, mid_ref):
    N, Hp, WpC = xpad_ref.shape            # (N, H+2, (W+2)*C) f32
    NH, WC = out_ref.shape                 # (N*H, W*C)
    H = Hp - 2
    C = (WpC - WC) // 2                    # padded width adds 2 pixels = 2*C lanes
    inv_cnt = 1.0 / float(NH * (WC // C))  # 1 / (N*H*W)

    # ---- conv1: 3 row-band matmuls, K = (W+2)*C, bf16 operands / f32 acc ----
    acc1 = jnp.zeros((NH, WC), jnp.float32)
    for ky in range(3):
        band = xpad_ref[:, ky:ky + H, :].reshape(NH, WpC).astype(jnp.bfloat16)
        acc1 = acc1 + jnp.dot(band, w1_ref[ky], preferred_element_type=jnp.float32)

    # ---- bn1 (batch stats, single pass sum/sumsq) + relu, lane-dense f32 ----
    s1 = _channel_allreduce(jnp.sum(acc1, axis=0, keepdims=True), C, WC)
    q1 = _channel_allreduce(jnp.sum(acc1 * acc1, axis=0, keepdims=True), C, WC)
    m1 = s1 * inv_cnt
    var1 = q1 * inv_cnt - m1 * m1
    sc1 = g1_ref[...] * jax.lax.rsqrt(var1 + EPS)
    sh1 = b1_ref[...] - m1 * sc1
    h1 = jnp.maximum(acc1 * sc1 + sh1, 0.0)

    # ---- stage h1 in bf16 scratch; only the two H-halo rows are zeroed ----
    mid_ref[:, 0:1, :] = jnp.zeros((N, 1, WC), jnp.bfloat16)
    mid_ref[:, Hp - 1:Hp, :] = jnp.zeros((N, 1, WC), jnp.bfloat16)
    mid_ref[:, 1:1 + H, :] = h1.reshape(N, H, WC).astype(jnp.bfloat16)

    # ---- conv2: same 3-matmul structure, K = W*C (W halo folded into w2) ----
    acc2 = jnp.zeros((NH, WC), jnp.float32)
    for ky in range(3):
        band = mid_ref[:, ky:ky + H, :].reshape(NH, WC)
        acc2 = acc2 + jnp.dot(band, w2_ref[ky], preferred_element_type=jnp.float32)

    # ---- bn2 + residual (interior slice of the single padded input) + relu ----
    s2 = _channel_allreduce(jnp.sum(acc2, axis=0, keepdims=True), C, WC)
    q2 = _channel_allreduce(jnp.sum(acc2 * acc2, axis=0, keepdims=True), C, WC)
    m2 = s2 * inv_cnt
    var2 = q2 * inv_cnt - m2 * m2
    sc2 = g2_ref[...] * jax.lax.rsqrt(var2 + EPS)
    sh2 = b2_ref[...] - m2 * sc2
    resid = xpad_ref[:, 1:1 + H, C:C + WC].reshape(NH, WC)
    out_ref[...] = jnp.maximum(acc2 * sc2 + sh2 + resid, 0.0)


def basic_block(x_nhwc, w1, g1, b1, w2, g2, b2):
    """x_nhwc: (N,H,W,C) f32; w1/w2: HWIO (3,3,C,C); g*/b*: per-channel, size C."""
    N, H, W, C = x_nhwc.shape
    assert W > 0 and (W & (W - 1)) == 0, "lane roll-butterfly needs power-of-two W"
    Hp, WC, WpC = H + 2, W * C, (W + 2) * C

    # Single activation input (padded); residual is taken from its interior.
    x_pad = jnp.pad(x_nhwc, ((0, 0), (1, 1), (1, 1), (0, 0))).reshape(N, Hp, WpC)

    # Host-side weight transform: fold kx taps + channels into banded matrices,
    # cast to bf16 for the MXU (f32 accumulation in-kernel).
    w1m = jnp.asarray(_row_conv_matrices(np.asarray(w1), W, True)).astype(jnp.bfloat16)
    w2m = jnp.asarray(_row_conv_matrices(np.asarray(w2), W, False)).astype(jnp.bfloat16)

    def lane_tile(p):  # per-channel BN param -> lane-dense (1, W*C) row
        return jnp.tile(jnp.reshape(p.astype(jnp.float32), (1, C)), (1, W))

    g1t, b1t, g2t, b2t = (lane_tile(p) for p in (g1, b1, g2, b2))

    vmem = pl.BlockSpec(memory_space=pltpu.MemorySpace.VMEM)
    cost = pl.CostEstimate(
        flops=2 * 2 * 9 * N * H * W * C * C,
        transcendentals=2 * WC,
        bytes_accessed=(x_pad.size + N * H * WC + 4 * WC) * 4
                       + (w1m.size + w2m.size) * 2,
    )
    # TODO(synk): at production ResNet shapes, tile over (N, H row-bands) with a
    # halo'd grid + BlockSpec double-buffering and a multi-pass BN reduction
    # ('arbitrary' stats axis, SMEM/VMEM accumulators), and mark the batch/row
    # axes 'parallel' so v7x's two TensorCores split the work; the whole-block
    # single-invocation version below targets the small test shape.
    out = pl.pallas_call(
        basic_block_kernel,
        out_shape=jax.ShapeDtypeStruct((N * H, WC), jnp.float32),
        in_specs=[vmem] * 7,
        out_specs=vmem,
        scratch_shapes=[pltpu.VMEM((N, Hp, WC), jnp.bfloat16)],
        cost_estimate=cost,
    )(x_pad, w1m, g1t, b1t, w2m, g2t, b2t)
    return out.reshape(N, H, W, C)


def basic_block_ref(x_nhwc, w1, g1, b1, w2, g2, b2, conv_dtype=jnp.float32):
    """Pure-JAX reference; conv_dtype=bfloat16 mirrors the kernel's MXU operands."""
    def conv(x, w):
        return jax.lax.conv_general_dilated(
            x.astype(conv_dtype), w.astype(conv_dtype),
            window_strides=(1, 1), padding="SAME",
            dimension_numbers=("NHWC", "HWIO", "NHWC"),
            preferred_element_type=jnp.float32)

    def bn(x, g, b):
        m = jnp.mean(x, axis=(0, 1, 2), keepdims=True)
        v = jnp.mean(jnp.square(x - m), axis=(0, 1, 2), keepdims=True)
        return ((x - m) * jax.lax.rsqrt(v + EPS) * g.reshape(1, 1, 1, -1)
                + b.reshape(1, 1, 1, -1))

    h = jax.nn.relu(bn(conv(x_nhwc, w1), g1, b1))
    h = bn(conv(h, w2), g2, b2)
    return jax.nn.relu(h + x_nhwc)


if __name__ == "__main__":
    # BasicBlock(inplanes=4, planes=4, stride=1, downsample=None)
    N, C, H, W = 2, 4, 16, 16                      # PyTorch NCHW input (2,4,16,16)
    key = jax.random.PRNGKey(0)
    kx, k1, k2, k3, k4, k5, k6 = jax.random.split(key, 7)

    x_nchw = jax.random.normal(kx, (N, C, H, W), jnp.float32)
    x_nhwc = jnp.transpose(x_nchw, (0, 2, 3, 1))   # NHWC for the kernel

    w1 = 0.1 * jax.random.normal(k1, (3, 3, C, C), jnp.float32)   # HWIO conv3x3
    w2 = 0.1 * jax.random.normal(k2, (3, 3, C, C), jnp.float32)
    g1 = 1.0 + 0.1 * jax.random.normal(k3, (C,), jnp.float32)
    b1 = 0.1 * jax.random.normal(k4, (C,), jnp.float32)
    g2 = 1.0 + 0.1 * jax.random.normal(k5, (C,), jnp.float32)
    b2 = 0.1 * jax.random.normal(k6, (C,), jnp.float32)

    out = jax.block_until_ready(basic_block(x_nhwc, w1, g1, b1, w2, g2, b2))
    assert out.shape == (N, H, W, C)

    # Tight check vs a reference that uses the same bf16 conv operands.
    ref_bf16 = basic_block_ref(x_nhwc, w1, g1, b1, w2, g2, b2,
                               conv_dtype=jnp.bfloat16)
    err_bf16 = float(jnp.max(jnp.abs(out - ref_bf16)))
    assert err_bf16 < 5e-3, err_bf16

    # Loose sanity check vs the pure-f32 reference (bf16 MXU operand rounding).
    ref_f32 = basic_block_ref(x_nhwc, w1, g1, b1, w2, g2, b2,
                              conv_dtype=jnp.float32)
    err_f32 = float(jnp.max(jnp.abs(out - ref_f32)))
    assert err_f32 < 1e-1, err_f32

    print("KERNEL_OK")
</pallas_src>

<mosaic_0001>
module attributes {stable_mosaic.version = 11 : i64} {
  func.func @basic_block_kernel(%arg0: memref<2x18x72xf32, #tpu.memory_space<vmem>>, %arg1: memref<3x72x64xbf16, #tpu.memory_space<vmem>>, %arg2: memref<1x64xf32, #tpu.memory_space<vmem>>, %arg3: memref<1x64xf32, #tpu.memory_space<vmem>>, %arg4: memref<3x64x64xbf16, #tpu.memory_space<vmem>>, %arg5: memref<1x64xf32, #tpu.memory_space<vmem>>, %arg6: memref<1x64xf32, #tpu.memory_space<vmem>>, %arg7: memref<32x64xf32, #tpu.memory_space<vmem>>, %arg8: memref<2x18x64xbf16, #tpu.memory_space<vmem>>) attributes {dimension_semantics = [], scalar_prefetch = 0 : i64, scratch_operands = 1 : i64, tpu.core_type = #tpu.core_type<tc>} {
    %cst = arith.constant 0.000000e+00 : f32
    %0 = vector.broadcast %cst : f32 to vector<32x64xf32>
    %c0 = arith.constant 0 : index
    %c0_0 = arith.constant 0 : index
    %c0_1 = arith.constant 0 : index
    %1 = vector.load %arg0[%c0, %c0_0, %c0_1] : memref<2x18x72xf32, #tpu.memory_space<vmem>>, vector<2x16x72xf32>
    %2 = vector.shape_cast %1 : vector<2x16x72xf32> to vector<32x72xf32>
    %3 = arith.truncf %2 : vector<32x72xf32> to vector<32x72xbf16>
    %c0_2 = arith.constant 0 : index
    %c0_3 = arith.constant 0 : index
    %c0_4 = arith.constant 0 : index
    %4 = vector.load %arg1[%c0_2, %c0_3, %c0_4] : memref<3x72x64xbf16, #tpu.memory_space<vmem>>, vector<1x72x64xbf16>
    %5 = vector.shape_cast %4 : vector<1x72x64xbf16> to vector<72x64xbf16>
    %cst_5 = arith.constant dense<0.000000e+00> : vector<32x64xf32>
    %6 = tpu.matmul %3, %5, %cst_5 {dimension_numbers = #tpu.dot_dimension_numbers<[1], [0], [0], [1], [0, 0, 1, 1], [], []>} : vector<32x72xbf16>, vector<72x64xbf16>, vector<32x64xf32> -> vector<32x64xf32>
    %7 = arith.addf %0, %6 : vector<32x64xf32>
    %c0_6 = arith.constant 0 : index
    %c1 = arith.constant 1 : index
    %c0_7 = arith.constant 0 : index
    %8 = vector.load %arg0[%c0_6, %c1, %c0_7] : memref<2x18x72xf32, #tpu.memory_space<vmem>>, vector<2x16x72xf32>
    %9 = vector.shape_cast %8 : vector<2x16x72xf32> to vector<32x72xf32>
    %10 = arith.truncf %9 : vector<32x72xf32> to vector<32x72xbf16>
    %c1_8 = arith.constant 1 : index
    %c0_9 = arith.constant 0 : index
    %c0_10 = arith.constant 0 : index
    %11 = vector.load %arg1[%c1_8, %c0_9, %c0_10] : memref<3x72x64xbf16, #tpu.memory_space<vmem>>, vector<1x72x64xbf16>
    %12 = vector.shape_cast %11 : vector<1x72x64xbf16> to vector<72x64xbf16>
    %cst_11 = arith.constant dense<0.000000e+00> : vector<32x64xf32>
    %13 = tpu.matmul %10, %12, %cst_11 {dimension_numbers = #tpu.dot_dimension_numbers<[1], [0], [0], [1], [0, 0, 1, 1], [], []>} : vector<32x72xbf16>, vector<72x64xbf16>, vector<32x64xf32> -> vector<32x64xf32>
    %14 = arith.addf %7, %13 : vector<32x64xf32>
    %c0_12 = arith.constant 0 : index
    %c2 = arith.constant 2 : index
    %c0_13 = arith.constant 0 : index
    %15 = vector.load %arg0[%c0_12, %c2, %c0_13] : memref<2x18x72xf32, #tpu.memory_space<vmem>>, vector<2x16x72xf32>
    %16 = vector.shape_cast %15 : vector<2x16x72xf32> to vector<32x72xf32>
    %17 = arith.truncf %16 : vector<32x72xf32> to vector<32x72xbf16>
    %c2_14 = arith.constant 2 : index
    %c0_15 = arith.constant 0 : index
    %c0_16 = arith.constant 0 : index
    %18 = vector.load %arg1[%c2_14, %c0_15, %c0_16] : memref<3x72x64xbf16, #tpu.memory_space<vmem>>, vector<1x72x64xbf16>
    %19 = vector.shape_cast %18 : vector<1x72x64xbf16> to vector<72x64xbf16>
    %cst_17 = arith.constant dense<0.000000e+00> : vector<32x64xf32>
    %20 = tpu.matmul %17, %19, %cst_17 {dimension_numbers = #tpu.dot_dimension_numbers<[1], [0], [0], [1], [0, 0, 1, 1], [], []>} : vector<32x72xbf16>, vector<72x64xbf16>, vector<32x64xf32> -> vector<32x64xf32>
    %21 = arith.addf %14, %20 : vector<32x64xf32>
    %cst_18 = arith.constant dense<0.000000e+00> : vector<64xf32>
    %22 = vector.multi_reduction <add>, %21, %cst_18 [0] : vector<32x64xf32> to vector<64xf32>
    %23 = vector.shape_cast %22 : vector<64xf32> to vector<1x64xf32>
    %c4_i32 = arith.constant 4 : i32
    %24 = tpu.dynamic_rotate %23 by %c4_i32 dim 1 : vector<1x64xf32>, i32 -> vector<1x64xf32>
    %25 = arith.addf %23, %24 : vector<1x64xf32>
    %c8_i32 = arith.constant 8 : i32
    %26 = tpu.dynamic_rotate %25 by %c8_i32 dim 1 : vector<1x64xf32>, i32 -> vector<1x64xf32>
    %27 = arith.addf %25, %26 : vector<1x64xf32>
    %c16_i32 = arith.constant 16 : i32
    %28 = tpu.dynamic_rotate %27 by %c16_i32 dim 1 : vector<1x64xf32>, i32 -> vector<1x64xf32>
    %29 = arith.addf %27, %28 : vector<1x64xf32>
    %c32_i32 = arith.constant 32 : i32
    %30 = tpu.dynamic_rotate %29 by %c32_i32 dim 1 : vector<1x64xf32>, i32 -> vector<1x64xf32>
    %31 = arith.addf %29, %30 : vector<1x64xf32>
    %32 = arith.mulf %21, %21 : vector<32x64xf32>
    %cst_19 = arith.constant dense<0.000000e+00> : vector<64xf32>
    %33 = vector.multi_reduction <add>, %32, %cst_19 [0] : vector<32x64xf32> to vector<64xf32>
    %34 = vector.shape_cast %33 : vector<64xf32> to vector<1x64xf32>
    %c4_i32_20 = arith.constant 4 : i32
    %35 = tpu.dynamic_rotate %34 by %c4_i32_20 dim 1 : vector<1x64xf32>, i32 -> vector<1x64xf32>
    %36 = arith.addf %34, %35 : vector<1x64xf32>
    %c8_i32_21 = arith.constant 8 : i32
    %37 = tpu.dynamic_rotate %36 by %c8_i32_21 dim 1 : vector<1x64xf32>, i32 -> vector<1x64xf32>
    %38 = arith.addf %36, %37 : vector<1x64xf32>
    %c16_i32_22 = arith.constant 16 : i32
    %39 = tpu.dynamic_rotate %38 by %c16_i32_22 dim 1 : vector<1x64xf32>, i32 -> vector<1x64xf32>
    %40 = arith.addf %38, %39 : vector<1x64xf32>
    %c32_i32_23 = arith.constant 32 : i32
    %41 = tpu.dynamic_rotate %40 by %c32_i32_23 dim 1 : vector<1x64xf32>, i32 -> vector<1x64xf32>
    %42 = arith.addf %40, %41 : vector<1x64xf32>
    %cst_24 = arith.constant 0.001953125 : f32
    %43 = vector.broadcast %cst_24 : f32 to vector<1x64xf32>
    %44 = arith.mulf %31, %43 : vector<1x64xf32>
    %cst_25 = arith.constant 0.001953125 : f32
    %45 = vector.broadcast %cst_25 : f32 to vector<1x64xf32>
    %46 = arith.mulf %42, %45 : vector<1x64xf32>
    %47 = arith.mulf %44, %44 : vector<1x64xf32>
    %48 = arith.subf %46, %47 : vector<1x64xf32>
    %c0_26 = arith.constant 0 : index
    %c0_27 = arith.constant 0 : index
    %49 = vector.load %arg2[%c0_26, %c0_27] : memref<1x64xf32, #tpu.memory_space<vmem>>, vector<1x64xf32>
    %cst_28 = arith.constant 9.99999974E-6 : f32
    %50 = vector.broadcast %cst_28 : f32 to vector<1x64xf32>
    %51 = arith.addf %48, %50 : vector<1x64xf32>
    %52 = math.rsqrt %51 : vector<1x64xf32>
    %53 = arith.mulf %49, %52 : vector<1x64xf32>
    %c0_29 = arith.constant 0 : index
    %c0_30 = arith.constant 0 : index
    %54 = vector.load %arg3[%c0_29, %c0_30] : memref<1x64xf32, #tpu.memory_space<vmem>>, vector<1x64xf32>
    %55 = arith.mulf %44, %53 : vector<1x64xf32>
    %56 = arith.subf %54, %55 : vector<1x64xf32>
    %57 = vector.broadcast %53 : vector<1x64xf32> to vector<32x64xf32>
    %58 = arith.mulf %21, %57 : vector<32x64xf32>
    %59 = vector.broadcast %56 : vector<1x64xf32> to vector<32x64xf32>
    %60 = arith.addf %58, %59 : vector<32x64xf32>
    %cst_31 = arith.constant 0.000000e+00 : f32
    %61 = vector.broadcast %cst_31 : f32 to vector<32x64xf32>
    %62 = arith.maximumf %60, %61 : vector<32x64xf32>
    %cst_32 = arith.constant 0.000000e+00 : bf16
    %63 = vector.broadcast %cst_32 : bf16 to vector<2x1x64xbf16>
    %c0_33 = arith.constant 0 : index
    %c0_34 = arith.constant 0 : index
    %c0_35 = arith.constant 0 : index
    %64 = vector.load %arg8[%c0_33, %c0_34, %c0_35] : memref<2x18x64xbf16, #tpu.memory_space<vmem>>, vector<2x1x64xbf16>
    tpu.vector_store %arg8[%c0_33, %c0_34, %c0_35], %63 {strides = array<i32>} : memref<2x18x64xbf16, #tpu.memory_space<vmem>>, vector<2x1x64xbf16>,
    %cst_36 = arith.constant 0.000000e+00 : bf16
    %65 = vector.broadcast %cst_36 : bf16 to vector<2x1x64xbf16>
    %c0_37 = arith.constant 0 : index
    %c17 = arith.constant 17 : index
    %c0_38 = arith.constant 0 : index
    %66 = vector.load %arg8[%c0_37, %c17, %c0_38] : memref<2x18x64xbf16, #tpu.memory_space<vmem>>, vector<2x1x64xbf16>
    tpu.vector_store %arg8[%c0_37, %c17, %c0_38], %65 {strides = array<i32>} : memref<2x18x64xbf16, #tpu.memory_space<vmem>>, vector<2x1x64xbf16>,
    %67 = vector.shape_cast %62 : vector<32x64xf32> to vector<2x16x64xf32>
    %68 = arith.truncf %67 : vector<2x16x64xf32> to vector<2x16x64xbf16>
    %c0_39 = arith.constant 0 : index
    %c1_40 = arith.constant 1 : index
    %c0_41 = arith.constant 0 : index
    %69 = vector.load %arg8[%c0_39, %c1_40, %c0_41] : memref<2x18x64xbf16, #tpu.memory_space<vmem>>, vector<2x16x64xbf16>
    tpu.vector_store %arg8[%c0_39, %c1_40, %c0_41], %68 {strides = array<i32>} : memref<2x18x64xbf16, #tpu.memory_space<vmem>>, vector<2x16x64xbf16>,
    %cst_42 = arith.constant 0.000000e+00 : f32
    %70 = vector.broadcast %cst_42 : f32 to vector<32x64xf32>
    %c0_43 = arith.constant 0 : index
    %c0_44 = arith.constant 0 : index
    %c0_45 = arith.constant 0 : index
    %71 = vector.load %arg8[%c0_43, %c0_44, %c0_45] : memref<2x18x64xbf16, #tpu.memory_space<vmem>>, vector<2x16x64xbf16>
    %72 = vector.shape_cast %71 : vector<2x16x64xbf16> to vector<32x64xbf16>
    %c0_46 = arith.constant 0 : index
    %c0_47 = arith.constant 0 : index
    %c0_48 = arith.constant 0 : index
    %73 = vector.load %arg4[%c0_46, %c0_47, %c0_48] : memref<3x64x64xbf16, #tpu.memory_space<vmem>>, vector<1x64x64xbf16>
    %74 = vector.shape_cast %73 : vector<1x64x64xbf16> to vector<64x64xbf16>
    %cst_49 = arith.constant dense<0.000000e+00> : vector<32x64xf32>
    %75 = tpu.matmul %72, %74, %cst_49 {dimension_numbers = #tpu.dot_dimension_numbers<[1], [0], [0], [1], [0, 0, 1, 1], [], []>} : vector<32x64xbf16>, vector<64x64xbf16>, vector<32x64xf32> -> vector<32x64xf32>
    %76 = arith.addf %70, %75 : vector<32x64xf32>
    %c0_50 = arith.constant 0 : index
    %c1_51 = arith.constant 1 : index
    %c0_52 = arith.constant 0 : index
    %77 = vector.load %arg8[%c0_50, %c1_51, %c0_52] : memref<2x18x64xbf16, #tpu.memory_space<vmem>>, vector<2x16x64xbf16>
    %78 = vector.shape_cast %77 : vector<2x16x64xbf16> to vector<32x64xbf16>
    %c1_53 = arith.constant 1 : index
    %c0_54 = arith.constant 0 : index
    %c0_55 = arith.constant 0 : index
    %79 = vector.load %arg4[%c1_53, %c0_54, %c0_55] : memref<3x64x64xbf16, #tpu.memory_space<vmem>>, vector<1x64x64xbf16>
    %80 = vector.shape_cast %79 : vector<1x64x64xbf16> to vector<64x64xbf16>
    %cst_56 = arith.constant dense<0.000000e+00> : vector<32x64xf32>
    %81 = tpu.matmul %78, %80, %cst_56 {dimension_numbers = #tpu.dot_dimension_numbers<[1], [0], [0], [1], [0, 0, 1, 1], [], []>} : vector<32x64xbf16>, vector<64x64xbf16>, vector<32x64xf32> -> vector<32x64xf32>
    %82 = arith.addf %76, %81 : vector<32x64xf32>
    %c0_57 = arith.constant 0 : index
    %c2_58 = arith.constant 2 : index
    %c0_59 = arith.constant 0 : index
    %83 = vector.load %arg8[%c0_57, %c2_58, %c0_59] : memref<2x18x64xbf16, #tpu.memory_space<vmem>>, vector<2x16x64xbf16>
    %84 = vector.shape_cast %83 : vector<2x16x64xbf16> to vector<32x64xbf16>
    %c2_60 = arith.constant 2 : index
    %c0_61 = arith.constant 0 : index
    %c0_62 = arith.constant 0 : index
    %85 = vector.load %arg4[%c2_60, %c0_61, %c0_62] : memref<3x64x64xbf16, #tpu.memory_space<vmem>>, vector<1x64x64xbf16>
    %86 = vector.shape_cast %85 : vector<1x64x64xbf16> to vector<64x64xbf16>
    %cst_63 = arith.constant dense<0.000000e+00> : vector<32x64xf32>
    %87 = tpu.matmul %84, %86, %cst_63 {dimension_numbers = #tpu.dot_dimension_numbers<[1], [0], [0], [1], [0, 0, 1, 1], [], []>} : vector<32x64xbf16>, vector<64x64xbf16>, vector<32x64xf32> -> vector<32x64xf32>
    %88 = arith.addf %82, %87 : vector<32x64xf32>
    %cst_64 = arith.constant dense<0.000000e+00> : vector<64xf32>
    %89 = vector.multi_reduction <add>, %88, %cst_64 [0] : vector<32x64xf32> to vector<64xf32>
    %90 = vector.shape_cast %89 : vector<64xf32> to vector<1x64xf32>
    %c4_i32_65 = arith.constant 4 : i32
    %91 = tpu.dynamic_rotate %90 by %c4_i32_65 dim 1 : vector<1x64xf32>, i32 -> vector<1x64xf32>
    %92 = arith.addf %90, %91 : vector<1x64xf32>
    %c8_i32_66 = arith.constant 8 : i32
    %93 = tpu.dynamic_rotate %92 by %c8_i32_66 dim 1 : vector<1x64xf32>, i32 -> vector<1x64xf32>
    %94 = arith.addf %92, %93 : vector<1x64xf32>
    %c16_i32_67 = arith.constant 16 : i32
    %95 = tpu.dynamic_rotate %94 by %c16_i32_67 dim 1 : vector<1x64xf32>, i32 -> vector<1x64xf32>
    %96 = arith.addf %94, %95 : vector<1x64xf32>
    %c32_i32_68 = arith.constant 32 : i32
    %97 = tpu.dynamic_rotate %96 by %c32_i32_68 dim 1 : vector<1x64xf32>, i32 -> vector<1x64xf32>
    %98 = arith.addf %96, %97 : vector<1x64xf32>
    %99 = arith.mulf %88, %88 : vector<32x64xf32>
    %cst_69 = arith.constant dense<0.000000e+00> : vector<64xf32>
    %100 = vector.multi_reduction <add>, %99, %cst_69 [0] : vector<32x64xf32> to vector<64xf32>
    %101 = vector.shape_cast %100 : vector<64xf32> to vector<1x64xf32>
    %c4_i32_70 = arith.constant 4 : i32
    %102 = tpu.dynamic_rotate %101 by %c4_i32_70 dim 1 : vector<1x64xf32>, i32 -> vector<1x64xf32>
    %103 = arith.addf %101, %102 : vector<1x64xf32>
    %c8_i32_71 = arith.constant 8 : i32
    %104 = tpu.dynamic_rotate %103 by %c8_i32_71 dim 1 : vector<1x64xf32>, i32 -> vector<1x64xf32>
    %105 = arith.addf %103, %104 : vector<1x64xf32>
    %c16_i32_72 = arith.constant 16 : i32
    %106 = tpu.dynamic_rotate %105 by %c16_i32_72 dim 1 : vector<1x64xf32>, i32 -> vector<1x64xf32>
    %107 = arith.addf %105, %106 : vector<1x64xf32>
    %c32_i32_73 = arith.constant 32 : i32
    %108 = tpu.dynamic_rotate %107 by %c32_i32_73 dim 1 : vector<1x64xf32>, i32 -> vector<1x64xf32>
    %109 = arith.addf %107, %108 : vector<1x64xf32>
    %cst_74 = arith.constant 0.001953125 : f32
    %110 = vector.broadcast %cst_74 : f32 to vector<1x64xf32>
    %111 = arith.mulf %98, %110 : vector<1x64xf32>
    %cst_75 = arith.constant 0.001953125 : f32
    %112 = vector.broadcast %cst_75 : f32 to vector<1x64xf32>
    %113 = arith.mulf %109, %112 : vector<1x64xf32>
    %114 = arith.mulf %111, %111 : vector<1x64xf32>
    %115 = arith.subf %113, %114 : vector<1x64xf32>
    %c0_76 = arith.constant 0 : index
    %c0_77 = arith.constant 0 : index
    %116 = vector.load %arg5[%c0_76, %c0_77] : memref<1x64xf32, #tpu.memory_space<vmem>>, vector<1x64xf32>
    %cst_78 = arith.constant 9.99999974E-6 : f32
    %117 = vector.broadcast %cst_78 : f32 to vector<1x64xf32>
    %118 = arith.addf %115, %117 : vector<1x64xf32>
    %119 = math.rsqrt %118 : vector<1x64xf32>
    %120 = arith.mulf %116, %119 : vector<1x64xf32>
    %c0_79 = arith.constant 0 : index
    %c0_80 = arith.constant 0 : index
    %121 = vector.load %arg6[%c0_79, %c0_80] : memref<1x64xf32, #tpu.memory_space<vmem>>, vector<1x64xf32>
    %122 = arith.mulf %111, %120 : vector<1x64xf32>
    %123 = arith.subf %121, %122 : vector<1x64xf32>
    %c0_81 = arith.constant 0 : index
    %c1_82 = arith.constant 1 : index
    %c4 = arith.constant 4 : index
    %124 = vector.load %arg0[%c0_81, %c1_82, %c4] : memref<2x18x72xf32, #tpu.memory_space<vmem>>, vector<2x16x64xf32>
    %125 = vector.shape_cast %124 : vector<2x16x64xf32> to vector<32x64xf32>
    %126 = vector.broadcast %120 : vector<1x64xf32> to vector<32x64xf32>
    %127 = arith.mulf %88, %126 : vector<32x64xf32>
    %128 = vector.broadcast %123 : vector<1x64xf32> to vector<32x64xf32>
    %129 = arith.addf %127, %128 : vector<32x64xf32>
    %130 = arith.addf %129, %125 : vector<32x64xf32>
    %cst_83 = arith.constant 0.000000e+00 : f32
    %131 = vector.broadcast %cst_83 : f32 to vector<32x64xf32>
    %132 = arith.maximumf %130, %131 : vector<32x64xf32>
    %c0_84 = arith.constant 0 : index
    %c0_85 = arith.constant 0 : index
    %133 = vector.load %arg7[%c0_84, %c0_85] : memref<32x64xf32, #tpu.memory_space<vmem>>, vector<32x64xf32>
    tpu.vector_store %arg7[%c0_84, %c0_85], %132 {strides = array<i32>} : memref<32x64xf32, #tpu.memory_space<vmem>>, vector<32x64xf32>,
    return
  }
}

</mosaic_0001>

<bundles_post_ra>
// kernel: tpu_custom_call.1
= control target key start
LH: loop header
LB: loop body
LE: loop exit
PB: predicated region body
PF: predicated region fallthrough
CT: control target
= control target key end

     0   :  { %vm86_vm0 = vcmask 588800   ;;  %vm93_vm1 = vcmask 1043456   ;;  %s1903_s0 = inlined_call_operand.vmem [shape: f32[2,18,72], index: 0, kind: input, shape index: {}]   ;;  %s1904_s1 = inlined_call_operand.vmem [shape: bf16[3,72,64], index: 1, kind: input, shape index: {}]   ;;  %s1905_s2 = inlined_call_operand.vmem [shape: f32[1,64], index: 2, kind: input, shape index: {}]   ;;  %s1906_s3 = inlined_call_operand.vmem [shape: f32[1,64], index: 3, kind: input, shape index: {}]   ;;  %s1907_s4 = inlined_call_operand.vmem [shape: bf16[3,64,64], index: 4, kind: input, shape index: {}]   ;;  %s1908_s5 = inlined_call_operand.vmem [shape: f32[1,64], index: 5, kind: input, shape index: {}]   ;;  %s1909_s6 = inlined_call_operand.vmem [shape: f32[1,64], index: 6, kind: input, shape index: {}]   ;;  %s1910_s7 = inlined_call_operand.hbm [shape: f32[32,64], index: 7, kind: output, shape index: {}]  }
   0x1   :  { %v1379_v0 = vld [vmem:[%s1904_s1 + $0x24] sm:$0xff]   ;;  %v1380_v1 = vld [vmem:[%s1904_s1 + $0x2c] sm:$0xff]   ;;  %v1381_v2 = vld [vmem:[%s1904_s1 + $0x34] sm:$0xff]  }
   0x2   :  { %1273 = vmatprep.subr.bf16.mxu0 %v1379_v0  ;;  %v43_v3 = vld [vmem:[%s1903_s0 + $0x1] sm:$0xff]  ;;  %v44_v4 = vld [vmem:[%s1903_s0 + $0x9] sm:$0xff]  ;;  %v1515_v9 = vld [vmem:[%s1903_s0 + $0x19] sm:$0xff] }
   0x3   :  { %1274 = vmatpush3.bf16.msra.mxu0 %v1379_v0  ;;  %v47_v5 = vpack.c.bf16 %v44_v4, %v43_v3  ;;  %v1382_v6 = vld [vmem:[%s1904_s1 + $0x3c] sm:$0xff]   ;;  %v1383_v7 = vld [vmem:[%s1904_s1 + $0x44] ss:$0 sps:$4 sm:$0xff]   ;;  %v29_v13 = vld [vmem:[%s1903_s0 + $0x8] sm:$0xff] }
   0x4   :  { %1275 = vmatprep.subr.bf16.mxu0 %v1380_v1  ;;  %v1384_v8 = vld [vmem:[%s1904_s1] sm:$0xff]   ;;  %v95_v11 = vsel %vm93_vm1, %v1383_v7, 0  ;;  %v1385_v15 = vld [vmem:[%s1904_s1 + $0x8] sm:$0xff]   ;;  %v1386_v17 = vld [vmem:[%s1904_s1 + $0x10] sm:$0xff]  }
   0x5   :  { %1283 = vmatprep.mubr.msk.bf16.mxu0 %vm86_vm0, %v47_v5  ;;  %v1520_v10 = vld [vmem:[%s1903_s0 + $0x21] sm:$0xff] }
   0x6   :  { %v28_v12 = vld [vmem:[%s1903_s0] sm:$0xff]  ;;  %v48_v14 = vpack.c.bf16 %v1520_v10, %v1515_v9 }
   0x7   :  { %1276 = vmatpush3.bf16.msra.mxu0 %v1380_v1  ;;  %v32_v16 = vpack.c.bf16 %v29_v13, %v28_v12 }
   0x8   :  { %1277 = vmatprep.subr.bf16.mxu0 %v1381_v2 }
   0xb   :  { %1278 = vmatpush3.bf16.msra.mxu0 %v1381_v2 }
   0xc   :  { %1279 = vmatprep.subr.bf16.mxu0 %v1382_v6 }
   0xf   :  { %1280 = vmatpush3.bf16.msra.mxu0 %v1382_v6 }
  0x10   :  { %1367 = vmatprep.subr.msk.bf16.mxu0 %vm93_vm1, %v1383_v7 }
  0x13   :  { %1282 = vmatpush3.bf16.msra.mxu0 %v95_v11 }
  0x14   :  { %1287 = vmatprep.subr.bf16.mxu0 %v1384_v8 }
  0x16   :  { %1284 = vmatmul.mubr.msk.bf16.vlgmr.msra.gmra.mrb[0].mxu0 %vm86_vm0, %v48_v14 }
  0x17   :  { %1288 = vmatpush3.bf16.msra.mxu0 %v1384_v8  ;;  %1297 = vmatprep.mubr.msk.bf16.mxu0 %vm86_vm0, %v32_v16 }
  0x18   :  { %1289 = vmatprep.subr.bf16.mxu0 %v1385_v15 }
  0x19   :  { %12 = vsyncpa [#allocation4], 0  ;;  %v1387_v18 = vld [vmem:[%s1904_s1 + $0x18] sm:$0xff]   ;;  %v1388_v19 = vld [vmem:[%s1904_s1 + $0x20] ss:$0 sps:$4 sm:$0xff]   ;;  %vm336_vm2 = vcmask 523264  }
  0x1a   :  { %v30_v20 = vld [vmem:[%s1903_s0 + $0x18] sm:$0xff]  ;;  %v31_v21 = vld [vmem:[%s1903_s0 + $0x20] sm:$0xff]  ;;  %v180_v22 = vsel %vm93_vm1, %v1388_v19, 0  ;;  %v1389_v23 = vld [vmem:[%s1904_s1 + $0x48] sm:$0xff]   ;;  %vm350_vm3 = vcmask 1048064   ;;  %s1439_s9 = smov 68  }
  0x1b   :  { %1290 = vmatpush3.bf16.msra.mxu0 %v1385_v15  ;;  %v231_v24 = vld [vmem:[%s1903_s0 + $0x2] sm:$0xff]  ;;  %v232_v25 = vld [vmem:[%s1903_s0 + $0xa] sm:$0xff]  ;;  %v33_v26 = vpack.c.bf16 %v31_v21, %v30_v20  ;;  %v1391_v29 = vld [vmem:[%s1904_s1 + $0x58] sm:$0xff]   ;;  %s1440_s10 = smov 72   ;;  %s1441_s11 = smov 80   ;;  %vm491_vm4 = vcmask 516096  }
  0x1c   :  { %1291 = vmatprep.subr.bf16.mxu0 %v1386_v17  ;;  %v235_v27 = vpack.c.bf16 %v232_v25, %v231_v24  ;;  %v1390_v28 = vld [vmem:[%s1904_s1 + $0x50] sm:$0xff]   ;;  %v1392_v30 = vld [vmem:[%s1904_s1 + $0x60] sm:$0xff]   ;;  %v1393_v31 = vld [vmem:[%s1904_s1 + $0x68] ss:$0 sps:$4 sm:$0xff]   ;;  %s1438_s1 = smov 64   ;;  %s1442_s12 = smov 96  }
  0x1d   :  { %v233_v32 = vld [vmem:[%s1903_s0 + $0x1a] sm:$0xff]  ;;  %v234_v33 = vld [vmem:[%s1903_s0 + $0x22] sm:$0xff]  ;;  %v281_v34 = vsel %vm93_vm1, %v1393_v31, 0  ;;  %vm492_vm5 = vsmask.f32 256  ;;  %vm562_vm10 = vcmask 519168  }
  0x1e   :  { %v236_v35 = vpack.c.bf16 %v234_v33, %v233_v32  ;;  %vm1651_vm6 = vmand %vm491_vm4, %vm492_vm5  ;;  %vm500_vm7 = vsmask.f32 7938  ;;  %vm520_vm9 = vsmask.f32 4368  ;;  %vm593_vm13 = vsmask.f32 3328 }
  0x1f   :  { %1292 = vmatpush3.bf16.msra.mxu0 %v1386_v17  ;;  %vm501_vm8 = vmand %vm491_vm4, %vm500_vm7  ;;  %vm594_vm14 = vsmask.f32 7440 }
  0x20   :  { %1293 = vmatprep.subr.bf16.mxu0 %v1387_v18  ;;  %vm1697_vm11 = vmor %vm492_vm5, %vm520_vm9 }
  0x21   :  { %vm1703_vm12 = vmand %vm562_vm10, %vm500_vm7 }
  0x22   :  { %vm1739_vm15 = vmor %vm593_vm13, %vm594_vm14 }
  0x23   :  { %1294 = vmatpush3.bf16.msra.mxu0 %v1387_v18 }
  0x24   :  { %1368 = vmatprep.subr.msk.bf16.mxu0 %vm93_vm1, %v1388_v19 }
  0x27   :  { %1296 = vmatpush3.bf16.msra.mxu0 %v180_v22 }
  0x28   :  { %1301 = vmatprep.subr.bf16.mxu0 %v1389_v23 }
  0x2a   :  { %1298 = vmatmul.mubr.msk.bf16.vlgmr.msra.gmra.mrb[0].mxu0 %vm86_vm0, %v33_v26 }
  0x2b   :  { %1302 = vmatpush3.bf16.msra.mxu0 %v1389_v23  ;;  %1311 = vmatprep.mubr.msk.bf16.mxu0 %vm86_vm0, %v235_v27 }
  0x2c   :  { %1303 = vmatprep.subr.bf16.mxu0 %v1390_v28 }
  0x2f   :  { %1304 = vmatpush3.bf16.msra.mxu0 %v1390_v28 }
  0x30   :  { %1305 = vmatprep.subr.bf16.mxu0 %v1391_v29 }
  0x33   :  { %1306 = vmatpush3.bf16.msra.mxu0 %v1391_v29 }
  0x34   :  { %1307 = vmatprep.subr.bf16.mxu0 %v1392_v30 }
  0x37   :  { %1308 = vmatpush3.bf16.msra.mxu0 %v1392_v30 }
  0x38   :  { %1369 = vmatprep.subr.msk.bf16.mxu0 %vm93_vm1, %v1393_v31  ;;  %vm834_vm1 = vcmask 1046532  }
  0x3b   :  { %1310 = vmatpush3.bf16.msra.mxu0 %v281_v34 }
  0x3e   :  { %1312 = vmatmul.mubr.msk.bf16.vlgmr.msra.gmra.mrb[0].mxu0 %vm86_vm0, %v236_v35  ;;  %vm833_vm0 = vcmask 1042432  }
  0x3f   :  { %vm1771_vm4 = vmor %vm833_vm0, %vm834_vm1 }
 0x111   :  { %v1586_v36 = vpop.f32.mrb[0].mxu0 }
 0x112   :  { %v1588_v37 = vpop.f32.mrb[1].mxu0  ;;  %v397_v41 = vmul.f32 %v1586_v36, %v1586_v36  ;;  %v340_v46 = vsel %vm336_vm2, %v1586_v36, 0.0 }
 0x113   :  { %v395_v38 = vmul.f32 %v1588_v37, %v1588_v37  ;;  %v1592_v39 = vpop.f32.mrb[2].mxu0  ;;  %v337_v42 = vsel %vm336_vm2, %v1588_v37, 0.0 }
 0x114   :  { %v1594_v40 = vpop.f32.mrb[3].mxu0  ;;  %v398_v48 = vmul.f32 %v1592_v39, %v1592_v39  ;;  %v402_v52 = vsel %vm336_vm2, %v397_v41, 0.0  ;;  %v342_v53 = vsel %vm336_vm2, %v1592_v39, 0.0 }
 0x115   :  { %v338_v43 = vsel %vm336_vm2, %v1594_v40, 0.0  ;;  %v396_v44 = vmul.f32 %v1594_v40, %v1594_v40  ;;  %v399_v47 = vsel %vm336_vm2, %v395_v38, 0.0 }
 0x116   :  { %v339_v45 = vadd.f32 %v338_v43, %v337_v42  ;;  %v404_v56 = vsel %vm336_vm2, %v398_v48, 0.0 }
 0x117   :  { %v400_v49 = vsel %vm336_vm2, %v396_v44, 0.0 }
 0x118   :  { %v341_v50 = vadd.f32 %v340_v46, %v339_v45  ;;  %v401_v51 = vadd.f32 %v400_v49, %v399_v47 }
 0x11a   :  { %v343_v54 = vadd.f32 %v342_v53, %v341_v50  ;;  %v403_v55 = vadd.f32 %v402_v52, %v401_v51  ;;  %v494_v52 = vld [vmem:[#allocation2] sm:$0x1]  ;;  %v497_v53 = vld [vmem:[#allocation2 + $0xc] sm:$0x1] }
 0x11c   :  { %v344_v57 = vrot.slane %v343_v54, 4  ;;  %v405_v58 = vadd.f32 %v404_v56, %v403_v55  ;;  %v502_v55 = vld [vmem:[#allocation2 + $0x8] sm:$0x1]  ;;  %v495_v56 = vsel %vm1651_vm6, 0, %v494_v52 }
 0x11d   :  { %496 = vst [vmem:[#allocation2] sm:$0x1] %v495_v56 }
 0x11e   :  { %v345_v59 = vadd.f32 %v344_v57, %v343_v54  ;;  %v406_v60 = vrot.slane %v405_v58, 4  ;;  %v498_v57 = vsel %vm1651_vm6, 0, %v497_v53 }
 0x11f   :  { %499 = vst [vmem:[#allocation2 + $0xc] sm:$0x1] %v498_v57 }
 0x120   :  { %v346_v61 = vrot.slane %v345_v59, 2  ;;  %v407_v62 = vadd.f32 %v406_v60, %v405_v58  ;;  %v505_v58 = vld [vmem:[#allocation2 + $0x14] sm:$0x1] }
 0x121   :  { %v506_v60 = vsel %vm501_vm8, 0, %v505_v58 }
 0x122   :  { %v347_v63 = vadd.f32 %v346_v61, %v345_v59  ;;  %v408_v0 = vrot.slane %v407_v62, 2  ;;  %v503_v59 = vsel %vm501_vm8, 0, %v502_v55  ;;  %507 = vst [vmem:[#allocation2 + $0x14] sm:$0x1] %v506_v60 }
 0x123   :  { %504 = vst [vmem:[#allocation2 + $0x8] sm:$0x1] %v503_v59 }
 0x124   :  { %v348_v1 = vrot.slane %v347_v63, 1  ;;  %v409_v2 = vadd.f32 %v408_v0, %v407_v62 }
 0x126   :  { %v349_v3 = vadd.f32 %v348_v1, %v347_v63  ;;  %v410_v4 = vrot.slane %v409_v2, 1  ;;  %v1394_v1 = vld [vmem:[%s1907_s4 + $0x20] sm:$0xff]  }
 0x127   :  { %1315 = vmatprep.subr.bf16.mxu1 %v1394_v1 }
 0x128   :  { %351 = vrot.lane.b32.xlu0 %v349_v3, %s1438_s1  ;;  %v411_v5 = vadd.f32 %v410_v4, %v409_v2  ;;  %v1395_v2 = vld [vmem:[%s1907_s4 + $0x28] sm:$0xff]   ;;  %1316 = vmatpush3.bf16.msra.mxu1 %v1394_v1  ;;  %v1397_v4 = vld [vmem:[%s1907_s4 + $0x38] sm:$0xff]  }
 0x129   :  { %1317 = vmatprep.subr.bf16.mxu1 %v1395_v2 }
 0x12a   :  { %v569_v56 = vld [vmem:[#allocation2 + $0x8] sm:$0x1] }
 0x12c   :  { %412 = vrot.lane.b32.xlu0 %v411_v5, %s1438_s1  ;;  %1318 = vmatpush3.bf16.msra.mxu1 %v1395_v2 }
 0x19a   :  { %v352_v6 = vpop.permute.xlu0 %351 }
 0x19b   :  { %v353_v7 = vsel %vm350_vm3, %v352_v6, %v349_v3 }
 0x19c   :  { %354 = vrot.lane.b32.xlu1 %v353_v7, %s1438_s1 }
 0x19e   :  { %v413_v8 = vpop.permute.xlu0 %412 }
 0x19f   :  { %v414_v11 = vsel %vm350_vm3, %v413_v8, %v411_v5 }
 0x1a0   :  { %415 = vrot.lane.b32.xlu1 %v414_v11, %s1438_s1 }
 0x20e   :  { %v355_v12 = vpop.permute.xlu1 %354 }
 0x20f   :  { %v356_v13 = vsel %vm350_vm3, %v355_v12, %v349_v3 }
 0x210   :  { %358 = vrot.lane.b32.xlu0 %v356_v13, %s1439_s9 }
 0x212   :  { %v416_v14 = vpop.permute.xlu1 %415 }
 0x213   :  { %v417_v15 = vsel %vm350_vm3, %v416_v14, %v411_v5 }
 0x214   :  { %419 = vrot.lane.b32.xlu1 %v417_v15, %s1439_s9 }
 0x282   :  { %v359_v16 = vpop.permute.xlu0 %358 }
 0x283   :  { %v361_v17 = vadd.f32 %v359_v16, %v349_v3  ;;  %v1396_v3 = vld [vmem:[%s1907_s4 + $0x30] sm:$0xff]  }
 0x284   :  { %1319 = vmatprep.subr.bf16.mxu1 %v1396_v3 }
 0x285   :  { %362 = vrot.lane.b32.xlu0 %v361_v17, %s1438_s1  ;;  %1320 = vmatpush3.bf16.msra.mxu1 %v1396_v3 }
 0x286   :  { %v420_v18 = vpop.permute.xlu1 %419  ;;  %1321 = vmatprep.subr.bf16.mxu1 %v1397_v4 }
 0x287   :  { %v422_v19 = vadd.f32 %v420_v18, %v411_v5  ;;  %v1679_v5 = vld [vmem:[%s1907_s4] sm:$0xff]  }
 0x289   :  { %423 = vrot.lane.b32.xlu1 %v422_v19, %s1438_s1  ;;  %1322 = vmatpush3.bf16.msra.mxu1 %v1397_v4 }
 0x28a   :  { %1327 = vmatprep.subr.bf16.mxu1 %v1679_v5 }
 0x2f7   :  { %v363_v20 = vpop.permute.xlu0 %362 }
 0x2f8   :  { %v364_v21 = vsel %vm350_vm3, %v363_v20, %v361_v17 }
 0x2f9   :  { %365 = vrot.lane.b32.xlu0 %v364_v21, %s1438_s1 }
 0x2fb   :  { %v424_v22 = vpop.permute.xlu1 %423 }
 0x2fc   :  { %v425_v23 = vsel %vm350_vm3, %v424_v22, %v422_v19 }
 0x2fd   :  { %426 = vrot.lane.b32.xlu1 %v425_v23, %s1438_s1  ;;  %v464_v23 = vld [vmem:[%s1906_s3] sm:$0x1] }
 0x36b   :  { %v366_v24 = vpop.permute.xlu0 %365 }
 0x36c   :  { %v367_v25 = vsel %vm350_vm3, %v366_v24, %v361_v17 }
 0x36d   :  { %369 = vrot.lane.b32.xlu0 %v367_v25, %s1440_s10 }
 0x36f   :  { %v427_v26 = vpop.permute.xlu1 %426 }
 0x370   :  { %v428_v27 = vsel %vm350_vm3, %v427_v26, %v422_v19 }
 0x371   :  { %430 = vrot.lane.b32.xlu1 %v428_v27, %s1440_s10 }
 0x3df   :  { %v370_v28 = vpop.permute.xlu0 %369 }
 0x3e0   :  { %v372_v29 = vadd.f32 %v370_v28, %v361_v17  ;;  %v468_v17 = vlaneseq }
 0x3e2   :  { %373 = vrot.lane.b32.xlu0 %v372_v29, %s1438_s1  ;;  %v469_v18 = vshrl.u32 %v468_v17, 7 }
 0x3e3   :  { %v431_v30 = vpop.permute.xlu1 %430 }
 0x3e4   :  { %v433_v31 = vadd.f32 %v431_v30, %v422_v19  ;;  %v460_v19 = vld [vmem:[%s1905_s2] sm:$0x1]  ;;  %v1685_v20 = vsub.s32 0, %v469_v18 }
 0x3e6   :  { %434 = vrot.lane.b32.xlu1 %v433_v31, %s1438_s1 }
 0x454   :  { %v374_v32 = vpop.permute.xlu0 %373 }
 0x455   :  { %v375_v33 = vsel %vm350_vm3, %v374_v32, %v372_v29 }
 0x456   :  { %376 = vrot.lane.b32.xlu0 %v375_v33, %s1438_s1 }
 0x458   :  { %v435_v34 = vpop.permute.xlu1 %434 }
 0x459   :  { %v436_v35 = vsel %vm350_vm3, %v435_v34, %v433_v31 }
 0x45a   :  { %437 = vrot.lane.b32.xlu1 %v436_v35, %s1438_s1 }
 0x4c8   :  { %v377_v38 = vpop.permute.xlu0 %376 }
 0x4c9   :  { %v378_v41 = vsel %vm350_vm3, %v377_v38, %v372_v29 }
 0x4ca   :  { %380 = vrot.lane.b32.xlu0 %v378_v41, %s1441_s11 }
 0x4cc   :  { %v438_v42 = vpop.permute.xlu1 %437 }
 0x4cd   :  { %v439_v43 = vsel %vm350_vm3, %v438_v42, %v433_v31 }
 0x4ce   :  { %441 = vrot.lane.b32.xlu1 %v439_v43, %s1441_s11 }
 0x53c   :  { %v381_v44 = vpop.permute.xlu0 %380 }
 0x53d   :  { %v383_v45 = vadd.f32 %v381_v44, %v372_v29 }
 0x53f   :  { %384 = vrot.lane.b32.xlu0 %v383_v45, %s1438_s1 }
 0x540   :  { %v442_v46 = vpop.permute.xlu1 %441 }
 0x541   :  { %v444_v47 = vadd.f32 %v442_v46, %v433_v31 }
 0x543   :  { %445 = vrot.lane.b32.xlu1 %v444_v47, %s1438_s1 }
 0x5b1   :  { %v385_v48 = vpop.permute.xlu0 %384 }
 0x5b2   :  { %v386_v49 = vsel %vm350_vm3, %v385_v48, %v383_v45 }
 0x5b3   :  { %387 = vrot.lane.b32.xlu0 %v386_v49, %s1438_s1  ;;  %v564_v49 = vld [vmem:[#allocation2] sm:$0xf] }
 0x5b5   :  { %v446_v50 = vpop.permute.xlu1 %445 }
 0x5b6   :  { %v447_v51 = vsel %vm350_vm3, %v446_v50, %v444_v47 }
 0x5b7   :  { %448 = vrot.lane.b32.xlu1 %v447_v51, %s1438_s1 }
 0x625   :  { %v388_v61 = vpop.permute.xlu0 %387 }
 0x626   :  { %v389_v62 = vsel %vm350_vm3, %v388_v61, %v383_v45  ;;  %v572_v61 = vld [vmem:[#allocation2 + $0xc] sm:$0xf] }
 0x627   :  { %391 = vrot.lane.b32.xlu0 %v389_v62, %s1442_s12  ;;  %v576_v62 = vld [vmem:[#allocation2 + $0x14] sm:$0x1] }
 0x629   :  { %v449_v63 = vpop.permute.xlu1 %448 }
 0x62a   :  { %v450_v0 = vsel %vm350_vm3, %v449_v63, %v444_v47 }
 0x62b   :  { %452 = vrot.lane.b32.xlu1 %v450_v0, %s1442_s12 }
 0x699   :  { %v392_v6 = vpop.permute.xlu0 %391 }
 0x69a   :  { %v394_v7 = vadd.f32 %v392_v6, %v383_v45 }
 0x69c   :  { %v456_v8 = vmul.f32 0.001953125, %v394_v7 }
 0x69d   :  { %v453_v11 = vpop.permute.xlu1 %452 }
 0x69e   :  { %v455_v12 = vadd.f32 %v453_v11, %v444_v47  ;;  %v458_v13 = vmul.f32 %v456_v8, %v456_v8 }
 0x6a0   :  { %v457_v14 = vmul.f32 0.001953125, %v455_v12 }
 0x6a2   :  { %v459_v15 = vsub.f32 %v457_v14, %v458_v13 }
 0x6a4   :  { %v461_v16 = vadd.f32 1e-05, %v459_v15 }
 0x6a6   :  { %1408 = vrsqrt.f32 %v461_v16 }
 0x6b0   :  { %v1409_v21 = vpop.eup %1408 }
 0x6b1   :  { %v463_v22 = vmul.f32 %v1409_v21, %v460_v19 }
 0x6b3   :  { %v465_v24 = vmul.f32 %v463_v22, %v456_v8  ;;  %v471_v25 = vrot.slane %v463_v22, %v1685_v20 }
 0x6b5   :  { %v466_v26 = vsub.f32 %v464_v23, %v465_v24  ;;  %v473_v27 = vmul.f32 %v471_v25, %v1588_v37  ;;  %v474_v28 = vmul.f32 %v471_v25, %v1594_v40  ;;  %v475_v29 = vmul.f32 %v1586_v36, %v471_v25 }
 0x6b6   :  { %v476_v30 = vmul.f32 %v1592_v39, %v471_v25 }
 0x6b7   :  { %v481_v31 = vrot.slane %v466_v26, %v1685_v20 }
 0x6b9   :  { %v483_v32 = vadd.f32 %v481_v31, %v473_v27  ;;  %v484_v33 = vadd.f32 %v481_v31, %v474_v28  ;;  %v485_v34 = vadd.f32 %v481_v31, %v475_v29  ;;  %v486_v35 = vadd.f32 %v481_v31, %v476_v30 }
 0x6bb   :  { %v487_v38 = vmax.f32 %v483_v32, 0.0  ;;  %v488_v41 = vmax.f32 %v484_v33, 0.0  ;;  %v489_v42 = vmax.f32 %v485_v34, 0.0  ;;  %v490_v43 = vmax.f32 %v486_v35, 0.0 }
 0x6bd   :  { %v1230_v44 = vpack.c.bf16 %v487_v38, %v487_v38  ;;  %v1231_v45 = vpack.c.bf16 %v488_v41, %v488_v41  ;;  %v1232_v46 = vpack.c.bf16 %v489_v42, %v489_v42  ;;  %v1233_v37 = vpack.c.bf16 %v490_v43, %v490_v43 }
 0x6bf   :  { %v523_v40 = vshrl.u32 %v1230_v44, 16  ;;  %v531_v36 = vshrl.u32 %v1231_v45, 16  ;;  %v540_v47 = vshrl.u32 %v1232_v46, 16  ;;  %v548_v39 = vshrl.u32 %v1233_v37, 16 }
 0x6c0   :  { %v526_v51 = vshll.u32 %v1230_v44, 16  ;;  %v534_v53 = vshll.u32 %v1231_v45, 16  ;;  %v543_v58 = vshll.u32 %v1232_v46, 16  ;;  %v551_v60 = vshll.u32 %v1233_v37, 16 }
 0x6c1   :  { %v525_v50 = vrot.slane %v523_v40, 7  ;;  %v533_v52 = vrot.slane %v531_v36, 7  ;;  %v542_v57 = vrot.slane %v540_v47, 7  ;;  %v550_v59 = vrot.slane %v548_v39, 7 }
 0x6c3   :  { %v528_v63 = vor.u32 %v526_v51, %v525_v50  ;;  %v529_v0 = vrot.slane %v525_v50, 4  ;;  %v536_v1 = vor.u32 %v534_v53, %v533_v52  ;;  %v538_v2 = vrot.slane %v533_v52, 4 }
 0x6c4   :  { %v545_v3 = vor.u32 %v543_v58, %v542_v57  ;;  %v546_v4 = vrot.slane %v542_v57, 4  ;;  %v553_v6 = vor.u32 %v551_v60, %v550_v59  ;;  %v555_v7 = vrot.slane %v550_v59, 4  ;;  %v1400_v58 = vld [vmem:[%s1907_s4 + $0x8] sm:$0xff]   ;;  %v1401_v60 = vld [vmem:[%s1907_s4 + $0x10] sm:$0xff]  }
 0x6c5   :  { %v537_v8 = vsel %vm1697_vm11, %v529_v0, %v536_v1  ;;  %v565_v11 = vsel %vm1703_vm12, %v528_v63, %v564_v49  ;;  %v570_v12 = vsel %vm1651_vm6, %v538_v2, %v569_v56  ;;  %v1404_v1 = vld [vmem:[%s1907_s4 + $0x40] sm:$0xff]  }
 0x6c6   :  { %v554_v13 = vsel %vm1697_vm11, %v546_v4, %v553_v6  ;;  %566 = vst [vmem:[#allocation2] sm:$0xf] %v565_v11  ;;  %568 = vst.msk [vmem:[#allocation2 + $0x4] sm:$0xf] %vm562_vm10, %v537_v8  ;;  %v573_v14 = vsel %vm1703_vm12, %v545_v3, %v572_v61  ;;  %v577_v15 = vsel %vm1651_vm6, %v555_v7, %v576_v62  ;;  %v1402_v62 = vld [vmem:[%s1907_s4 + $0x18] sm:$0xff]   ;;  %v1405_v8 = vld [vmem:[%s1907_s4 + $0x48] sm:$0xff]  }
 0x6c7   :  { %571 = vst [vmem:[#allocation2 + $0x8] sm:$0x1] %v570_v12  ;;  %574 = vst [vmem:[#allocation2 + $0xc] sm:$0xf] %v573_v14  ;;  %v1406_v12 = vld [vmem:[%s1907_s4 + $0x50] sm:$0xff]   ;;  %v1407_v14 = vld [vmem:[%s1907_s4 + $0x58] sm:$0xff]  }
 0x6c8   :  { %575 = vst.msk [vmem:[#allocation2 + $0x10] sm:$0xf] %vm562_vm10, %v554_v13  ;;  %578 = vst [vmem:[#allocation2 + $0x14] sm:$0x1] %v577_v15 }
 0x6cd   :  { %v579_v16 = vld [vmem:[#allocation2] sm:$0xf]  ;;  %v1721_v17 = vld [vmem:[#allocation2 + $0x4] sm:$0xf] }
 0x6ce   :  { %v1723_v18 = vld [vmem:[#allocation2 + $0x8] sm:$0x1]  ;;  %v597_v19 = vshrl.u32 %v579_v16, 16  ;;  %v600_v21 = vshll.u32 %v579_v16, 16  ;;  %v606_v22 = vshll.u32 %v1721_v17, 16  ;;  %v610_v23 = vshrl.u32 %v1721_v17, 16 }
 0x6cf   :  { %v1727_v24 = vld [vmem:[#allocation2 + $0xc] sm:$0xf]  ;;  %v616_v54 = vshll.u32 %v1723_v18, 16  ;;  %v1730_v25 = vld [vmem:[#allocation2 + $0x10] sm:$0xf]  ;;  %v1204_v59 = vcombine.low %v579_v16, %v1721_v17  ;;  %v838_v61 = vrot.slane %v1721_v17, 5 }
 0x6d0   :  { %v599_v26 = vrot.slane %v597_v19, 4  ;;  %v602_v27 = vrot.slane %v600_v21, 5  ;;  %v608_v28 = vrot.slane %v606_v22, 5  ;;  %v612_v29 = vrot.slane %v610_v23, 4  ;;  %v1732_v30 = vld [vmem:[#allocation2 + $0x14] sm:$0x1] }
 0x6d1   :  { %v621_v31 = vshrl.u32 %v1727_v24, 16  ;;  %v624_v32 = vshll.u32 %v1727_v24, 16  ;;  %v630_v33 = vshll.u32 %v1730_v25, 16  ;;  %v634_v38 = vshrl.u32 %v1730_v25, 16  ;;  %v827_v63 = vld [vmem:[#allocation2] sm:$0xe] }
 0x6d2   :  { %v603_v34 = vor.u32 %v602_v27, %v599_v26  ;;  %v613_v35 = vor.u32 %v612_v29, %v608_v28  ;;  %v618_v42 = vrot.slane %v616_v54, 5  ;;  %v640_v36 = vshll.u32 %v1732_v30, 16  ;;  %v828_v15 = vld [vmem:[#allocation2 + $0xc] sm:$0xe] }
 0x6d3   :  { %v623_v43 = vrot.slane %v621_v31, 4  ;;  %v626_v44 = vrot.slane %v624_v32, 5  ;;  %v632_v45 = vrot.slane %v630_v33, 5  ;;  %v636_v40 = vrot.slane %v634_v38, 4 }
 0x6d4   :  { %v604_v46 = vrot.slane %v603_v34, 4  ;;  %v614_v37 = vrot.slane %v613_v35, 4  ;;  %v642_v53 = vrot.slane %v640_v36, 5  ;;  %v840_v0 = vrot.slane %v838_v61, 4 }
 0x6d5   :  { %v627_v47 = vor.u32 %v626_v44, %v623_v43  ;;  %v637_v49 = vor.u32 %v636_v40, %v632_v45  ;;  %v1212_v2 = vrot.slane %v827_v63, 9  ;;  %v1205_v6 = vcombine.low %v1727_v24, %v1730_v25 }
 0x6d6   :  { %v609_v39 = vsel %vm1739_vm15, %v604_v46, %v608_v28  ;;  %v619_v48 = vsel %vm1739_vm15, %v614_v37, %v618_v42  ;;  %v845_v13 = vrot.slane %v1730_v25, 5  ;;  %v848_v17 = vrot.slane %v1732_v30, 5 }
 0x6d7   :  { %v1196_v50 = vcombine.low %v609_v39, %v619_v48  ;;  %v628_v51 = vrot.slane %v627_v47, 4  ;;  %v638_v52 = vrot.slane %v637_v49, 4  ;;  %v839_v7 = vsel %vm1771_vm4, %v1212_v2, %v838_v61 }
 0x6d8   :  { %v847_v16 = vrot.slane %v845_v13, 4 }
 0x6d9   :  { %1323 = vmatprep.mubr.msk.bf16.mxu1 %vm336_vm2, %v1196_v50  ;;  %v633_v55 = vsel %vm1739_vm15, %v628_v51, %v632_v45  ;;  %v643_v56 = vsel %vm1739_vm15, %v638_v52, %v642_v53 }
 0x6da   :  { %v1197_v57 = vcombine.low %v633_v55, %v643_v56  ;;  %v849_v19 = vsel %vm1771_vm4, %v847_v16, %v848_v17 }
 0x6dc   :  { %1324 = vmatmul.mubr.msk.bf16.vlgmr.msra.gmra.mrb[0].mxu1 %vm336_vm2, %v1197_v57 }
 0x6dd   :  { %1328 = vmatpush3.bf16.msra.mxu1 %v1679_v5  ;;  %1335 = vmatprep.mubr.msk.bf16.mxu1 %vm336_vm2, %v1204_v59  ;;  %v841_v5 = vrot.slane %v1723_v18, 5  ;;  %v1213_v18 = vrot.slane %v828_v15, 9 }
 0x6de   :  { %1329 = vmatprep.subr.bf16.mxu1 %v1400_v58 }
 0x6df   :  { %v842_v4 = vsel %vm1771_vm4, %v840_v0, %v841_v5  ;;  %v846_v21 = vsel %vm1771_vm4, %v1213_v18, %v845_v13 }
 0x6e0   :  { %v1222_v11 = vcombine.low %v839_v7, %v842_v4  ;;  %v1223_v22 = vcombine.low %v846_v21, %v849_v19 }
 0x6e1   :  { %1330 = vmatpush3.bf16.msra.mxu1 %v1400_v58 }
 0x6e2   :  { %1331 = vmatprep.subr.bf16.mxu1 %v1401_v60 }
 0x6e5   :  { %1332 = vmatpush3.bf16.msra.mxu1 %v1401_v60 }
 0x6e6   :  { %1333 = vmatprep.subr.bf16.mxu1 %v1402_v62 }
 0x6e9   :  { %1334 = vmatpush3.bf16.msra.mxu1 %v1402_v62 }
 0x6ea   :  { %1339 = vmatprep.subr.bf16.mxu1 %v1404_v1 }
 0x6ec   :  { %1336 = vmatmul.mubr.msk.bf16.vlgmr.msra.gmra.mrb[0].mxu1 %vm336_vm2, %v1205_v6 }
 0x6ed   :  { %1340 = vmatpush3.bf16.msra.mxu1 %v1404_v1  ;;  %1347 = vmatprep.mubr.msk.bf16.mxu1 %vm336_vm2, %v1222_v11 }
 0x6ee   :  { %1341 = vmatprep.subr.bf16.mxu1 %v1405_v8 }
 0x6f1   :  { %1342 = vmatpush3.bf16.msra.mxu1 %v1405_v8 }
 0x6f2   :  { %1343 = vmatprep.subr.bf16.mxu1 %v1406_v12 }
 0x6f5   :  { %1344 = vmatpush3.bf16.msra.mxu1 %v1406_v12 }
 0x6f6   :  { %1345 = vmatprep.subr.bf16.mxu1 %v1407_v14 }
 0x6f9   :  { %1346 = vmatpush3.bf16.msra.mxu1 %v1407_v14 }
 0x6fc   :  { %1348 = vmatmul.mubr.msk.bf16.vlgmr.msra.gmra.mrb[0].mxu1 %vm336_vm2, %v1223_v22 }
 0x7cf   :  { %v1799_v23 = vpop.f32.mrb[0].mxu1 }
 0x7d0   :  { %v1801_v24 = vpop.f32.mrb[1].mxu1  ;;  %v1007_v27 = vmul.f32 %v1799_v23, %v1799_v23  ;;  %v951_v32 = vsel %vm336_vm2, %v1799_v23, 0.0 }
 0x7d1   :  { %v1005_v54 = vmul.f32 %v1801_v24, %v1801_v24  ;;  %v1805_v25 = vpop.f32.mrb[2].mxu1  ;;  %v948_v28 = vsel %vm336_vm2, %v1801_v24, 0.0 }
 0x7d2   :  { %v1807_v26 = vpop.f32.mrb[3].mxu1  ;;  %v1008_v34 = vmul.f32 %v1805_v25, %v1805_v25  ;;  %v1012_v42 = vsel %vm336_vm2, %v1007_v27, 0.0  ;;  %v953_v43 = vsel %vm336_vm2, %v1805_v25, 0.0 }
 0x7d3   :  { %v949_v29 = vsel %vm336_vm2, %v1807_v26, 0.0  ;;  %v1006_v30 = vmul.f32 %v1807_v26, %v1807_v26  ;;  %v1009_v33 = vsel %vm336_vm2, %v1005_v54, 0.0 }
 0x7d4   :  { %v950_v31 = vadd.f32 %v949_v29, %v948_v28  ;;  %v1014_v46 = vsel %vm336_vm2, %v1008_v34, 0.0 }
 0x7d5   :  { %v1010_v35 = vsel %vm336_vm2, %v1006_v30, 0.0 }
 0x7d6   :  { %v952_v38 = vadd.f32 %v951_v32, %v950_v31  ;;  %v1011_v41 = vadd.f32 %v1010_v35, %v1009_v33 }
 0x7d8   :  { %v954_v44 = vadd.f32 %v953_v43, %v952_v38  ;;  %v1013_v45 = vadd.f32 %v1012_v42, %v1011_v41 }
 0x7da   :  { %v955_v37 = vrot.slane %v954_v44, 4  ;;  %v1015_v40 = vadd.f32 %v1014_v46, %v1013_v45 }
 0x7dc   :  { %v956_v36 = vadd.f32 %v955_v37, %v954_v44  ;;  %v1016_v47 = vrot.slane %v1015_v40, 4  ;;  %v1412_v37 = vld [vmem:[%s1903_s0 + $0x1] sm:$0xff] }
 0x7de   :  { %v957_v39 = vrot.slane %v956_v36, 2  ;;  %v1017_v48 = vadd.f32 %v1016_v47, %v1015_v40  ;;  %v1413_v40 = vld [vmem:[%s1903_s0 + $0x9] sm:$0xff] }
 0x7e0   :  { %v958_v49 = vadd.f32 %v957_v39, %v956_v36  ;;  %v1018_v50 = vrot.slane %v1017_v48, 2 }
 0x7e2   :  { %v959_v51 = vrot.slane %v958_v49, 1  ;;  %v1019_v52 = vadd.f32 %v1018_v50, %v1017_v48 }
 0x7e4   :  { %v960_v53 = vadd.f32 %v959_v51, %v958_v49  ;;  %v1020_v55 = vrot.slane %v1019_v52, 1 }
 0x7e6   :  { %961 = vrot.lane.b32.xlu0 %v960_v53, %s1438_s1  ;;  %v1021_v56 = vadd.f32 %v1020_v55, %v1019_v52  ;;  %v1070_v55 = vld [vmem:[%s1908_s5] sm:$0x1]  ;;  %s1444_s5 = smov [#allocation3]  }
 0x7e8   :  { %1022 = vrot.lane.b32.xlu1 %v1021_v56, %s1438_s1 }
 0x858   :  { %v962_v57 = vpop.permute.xlu0 %961 }
 0x859   :  { %v963_v58 = vsel %vm350_vm3, %v962_v57, %v960_v53 }
 0x85a   :  { %v1023_v59 = vpop.permute.xlu1 %1022  ;;  %964 = vrot.lane.b32.xlu0 %v963_v58, %s1438_s1 }
 0x85b   :  { %v1024_v60 = vsel %vm350_vm3, %v1023_v59, %v1021_v56 }
 0x85c   :  { %1025 = vrot.lane.b32.xlu1 %v1024_v60, %s1438_s1 }
 0x8cc   :  { %v965_v61 = vpop.permute.xlu0 %964 }
 0x8cd   :  { %v966_v62 = vsel %vm350_vm3, %v965_v61, %v960_v53 }
 0x8ce   :  { %v1026_v63 = vpop.permute.xlu1 %1025  ;;  %968 = vrot.lane.b32.xlu0 %v966_v62, %s1439_s9 }
 0x8cf   :  { %v1027_v0 = vsel %vm350_vm3, %v1026_v63, %v1021_v56 }
 0x8d0   :  { %1029 = vrot.lane.b32.xlu1 %v1027_v0, %s1439_s9 }
 0x940   :  { %v969_v5 = vpop.permute.xlu0 %968 }
 0x941   :  { %v971_v1 = vadd.f32 %v969_v5, %v960_v53 }
 0x942   :  { %v1030_v2 = vpop.permute.xlu1 %1029 }
 0x943   :  { %v1032_v3 = vadd.f32 %v1030_v2, %v1021_v56  ;;  %972 = vrot.lane.b32.xlu0 %v971_v1, %s1438_s1 }
 0x945   :  { %1033 = vrot.lane.b32.xlu1 %v1032_v3, %s1438_s1 }
 0x9b5   :  { %v973_v4 = vpop.permute.xlu0 %972 }
 0x9b6   :  { %v974_v6 = vsel %vm350_vm3, %v973_v4, %v971_v1 }
 0x9b7   :  { %v1034_v7 = vpop.permute.xlu1 %1033  ;;  %975 = vrot.lane.b32.xlu0 %v974_v6, %s1438_s1 }
 0x9b8   :  { %v1035_v8 = vsel %vm350_vm3, %v1034_v7, %v1032_v3 }
 0x9b9   :  { %1036 = vrot.lane.b32.xlu1 %v1035_v8, %s1438_s1 }
 0xa29   :  { %v976_v11 = vpop.permute.xlu0 %975 }
 0xa2a   :  { %v977_v12 = vsel %vm350_vm3, %v976_v11, %v971_v1 }
 0xa2b   :  { %v1037_v13 = vpop.permute.xlu1 %1036  ;;  %979 = vrot.lane.b32.xlu0 %v977_v12, %s1440_s10 }
 0xa2c   :  { %v1038_v14 = vsel %vm350_vm3, %v1037_v13, %v1032_v3 }
 0xa2d   :  { %1040 = vrot.lane.b32.xlu1 %v1038_v14, %s1440_s10  ;;  %s1443_s10 = smov 124  }
 0xa9d   :  { %v980_v15 = vpop.permute.xlu0 %979 }
 0xa9e   :  { %v982_v16 = vadd.f32 %v980_v15, %v971_v1 }
 0xa9f   :  { %v1041_v17 = vpop.permute.xlu1 %1040 }
 0xaa0   :  { %v1043_v18 = vadd.f32 %v1041_v17, %v1032_v3  ;;  %983 = vrot.lane.b32.xlu0 %v982_v16, %s1438_s1 }
 0xaa2   :  { %1044 = vrot.lane.b32.xlu1 %v1043_v18, %s1438_s1 }
 0xb12   :  { %v984_v19 = vpop.permute.xlu0 %983 }
 0xb13   :  { %v985_v21 = vsel %vm350_vm3, %v984_v19, %v982_v16 }
 0xb14   :  { %v1045_v22 = vpop.permute.xlu1 %1044  ;;  %986 = vrot.lane.b32.xlu0 %v985_v21, %s1438_s1 }
 0xb15   :  { %v1046_v54 = vsel %vm350_vm3, %v1045_v22, %v1043_v18 }
 0xb16   :  { %1047 = vrot.lane.b32.xlu1 %v1046_v54, %s1438_s1 }
 0xb86   :  { %v987_v27 = vpop.permute.xlu0 %986 }
 0xb87   :  { %v988_v28 = vsel %vm350_vm3, %v987_v27, %v982_v16 }
 0xb88   :  { %v1048_v29 = vpop.permute.xlu1 %1047  ;;  %990 = vrot.lane.b32.xlu0 %v988_v28, %s1441_s11 }
 0xb89   :  { %v1049_v30 = vsel %vm350_vm3, %v1048_v29, %v1043_v18 }
 0xb8a   :  { %1051 = vrot.lane.b32.xlu1 %v1049_v30, %s1441_s11 }
 0xbfa   :  { %v991_v31 = vpop.permute.xlu0 %990 }
 0xbfb   :  { %v993_v32 = vadd.f32 %v991_v31, %v982_v16 }
 0xbfc   :  { %v1052_v33 = vpop.permute.xlu1 %1051 }
 0xbfd   :  { %v1054_v34 = vadd.f32 %v1052_v33, %v1043_v18  ;;  %994 = vrot.lane.b32.xlu0 %v993_v32, %s1438_s1 }
 0xbff   :  { %1055 = vrot.lane.b32.xlu1 %v1054_v34, %s1438_s1 }
 0xc6f   :  { %v995_v35 = vpop.permute.xlu0 %994 }
 0xc70   :  { %v996_v38 = vsel %vm350_vm3, %v995_v35, %v993_v32 }
 0xc71   :  { %v1056_v41 = vpop.permute.xlu1 %1055  ;;  %997 = vrot.lane.b32.xlu0 %v996_v38, %s1438_s1 }
 0xc72   :  { %v1057_v42 = vsel %vm350_vm3, %v1056_v41, %v1054_v34 }
 0xc73   :  { %1058 = vrot.lane.b32.xlu1 %v1057_v42, %s1438_s1 }
 0xce3   :  { %v998_v43 = vpop.permute.xlu0 %997 }
 0xce4   :  { %v999_v44 = vsel %vm350_vm3, %v998_v43, %v993_v32 }
 0xce5   :  { %v1059_v45 = vpop.permute.xlu1 %1058  ;;  %1001 = vrot.lane.b32.xlu0 %v999_v44, %s1442_s12 }
 0xce6   :  { %v1060_v46 = vsel %vm350_vm3, %v1059_v45, %v1054_v34 }
 0xce7   :  { %1062 = vrot.lane.b32.xlu1 %v1060_v46, %s1442_s12 }
 0xce9   :  { %1105 = vrot.lane.b32.xlu0 %v1412_v37, %s1443_s10 }
 0xceb   :  { %1107 = vrot.lane.b32.xlu1 %v1413_v40, %s1443_s10 }
 0xced   :  { %1109 = vrot.lane.b32.xlu0 %v1515_v9, %s1443_s10  ;;  %v1074_v9 = vld [vmem:[%s1909_s6] sm:$0x1]  ;;  %s1134_s6 = sshll.u32 %s1444_s5, 4  ;;  %s1135_s6 = int_to_ptr.vmem [resolvable:$true] %s1134_s6 }
 0xcee   :  { %s1414_s22 = scalar_lea.vmem %s1135_s6, 512  ;;  %p1419_p1 = scmp.lt.s32.totalorder %s1135_s6, %s1135_s6 }
 0xcef   :  { %1111 = vrot.lane.b32.xlu1 %v1520_v10, %s1443_s10  ;;  %p1415_p0 = scmp.ne.s32.totalorder %s1135_s6, %s1414_s22  ;;  %p1420_p2 = scmp.lt.s32.totalorder %s1414_s22, %s1414_s22 }
 0xcf1   :  { %p1421_p3 = por %p1420_p2, %p1419_p1 }
 0xcf3   :  { %p1422_p4 = pnand %p1421_p3, %p1415_p0 }
 0xd57   :  { %v1002_v36 = vpop.permute.xlu0 %1001 }
 0xd58   :  { %v1004_v47 = vadd.f32 %v1002_v36, %v993_v32 }
 0xd59   :  { %v1063_v39 = vpop.permute.xlu1 %1062 }
 0xd5a   :  { %v1066_v48 = vmul.f32 0.001953125, %v1004_v47  ;;  %v1065_v49 = vadd.f32 %v1063_v39, %v1054_v34 }
 0xd5b   :  { %v1106_v58 = vpop.permute.xlu0 %1105 }
 0xd5c   :  { %v1068_v50 = vmul.f32 %v1066_v48, %v1066_v48  ;;  %v1067_v51 = vmul.f32 0.001953125, %v1065_v49 }
 0xd5d   :  { %v1108_v10 = vpop.permute.xlu1 %1107 }
 0xd5e   :  { %v1069_v52 = vsub.f32 %v1067_v51, %v1068_v50 }
 0xd5f   :  { %v1110_v3 = vpop.permute.xlu0 %1109 }
 0xd60   :  { %v1071_v53 = vadd.f32 1e-05, %v1069_v52 }
 0xd61   :  { %v1112_v2 = vpop.permute.xlu1 %1111 }
 0xd62   :  { %1410 = vrsqrt.f32 %v1071_v53 }
 0xd6c   :  { %v1411_v56 = vpop.eup %1410 }
 0xd6d   :  { %v1073_v57 = vmul.f32 %v1411_v56, %v1070_v55 }
 0xd6f   :  { %v1075_v59 = vmul.f32 %v1073_v57, %v1066_v48  ;;  %v1085_v60 = vrot.slane %v1073_v57, %v1685_v20 }
 0xd71   :  { %v1076_v61 = vsub.f32 %v1074_v9, %v1075_v59  ;;  %v1088_v62 = vmul.f32 %v1085_v60, %v1807_v26  ;;  %v1087_v0 = vmul.f32 %v1085_v60, %v1801_v24  ;;  %v1090_v5 = vmul.f32 %v1805_v25, %v1085_v60 }
 0xd72   :  { %v1089_v1 = vmul.f32 %v1799_v23, %v1085_v60 }
 0xd73   :  { %v1095_v63 = vrot.slane %v1076_v61, %v1685_v20 }
 0xd75   :  { %v1098_v4 = vadd.f32 %v1095_v63, %v1088_v62  ;;  %v1097_v6 = vadd.f32 %v1095_v63, %v1087_v0  ;;  %v1100_v7 = vadd.f32 %v1095_v63, %v1090_v5  ;;  %v1099_v8 = vadd.f32 %v1095_v63, %v1089_v1 }
 0xd77   :  { %v1118_v11 = vadd.f32 %v1108_v10, %v1098_v4  ;;  %v1117_v12 = vadd.f32 %v1106_v58, %v1097_v6  ;;  %v1120_v13 = vadd.f32 %v1112_v2, %v1100_v7  ;;  %v1119_v26 = vadd.f32 %v1110_v3, %v1099_v8 }
 0xd79   :  { %v1122_v14 = vmax.f32 %v1118_v11, 0.0  ;;  %v1121_v20 = vmax.f32 %v1117_v12, 0.0  ;;  %v1124_v15 = vmax.f32 %v1120_v13, 0.0  ;;  %v1123_v24 = vmax.f32 %v1119_v26, 0.0 }
 0xd7b   :  { %1126 = vst.msk [vmem:[#allocation3 + $0x8] sm:$0xff] %vm336_vm2, %v1122_v14  ;;  %1125 = vst.msk [vmem:[#allocation3] sm:$0xff] %vm336_vm2, %v1121_v20 }
 0xd7c   :  { %1128 = vst.msk [vmem:[#allocation3 + $0x18] sm:$0xff] %vm336_vm2, %v1124_v15  ;;  %1127 = vst.msk [vmem:[#allocation3 + $0x10] sm:$0xff] %vm336_vm2, %v1123_v24 }
 0xd7d   :  { %1425 = shalt.err (!%p1422_p4)
}
 0xd7e   :  { %s1426_s25 = scalar_lea.hbm %s1910_s7, 512 }
 0xd7f   :  { %p1427_p5 = scmp.ne.s32.totalorder %s1910_s7, %s1426_s25  ;;  %p1430_p6 = scmp.lt.u32.totalorder %s1426_s25, %s1910_s7 }
 0xd81   :  { %p1432_p7 = pnand %p1430_p6, %p1427_p5 }
 0xd83   :  { %1435 = shalt.err (!%p1432_p7)
}
 0xd84   :  { %s1445_s28 = smov 128   ;;  %s1446_s29 = smov 8  }
 0xd85   :  { %1140 = dma.vmem_to_hbm [thread:$0]  %s1135_s6, 512, %s1910_s7, [#allocation4], %s1445_s28, %s1445_s28, %s1446_s29  }
 0xd86   :  { %1436 = dma.done.wait [#allocation4], 512  }
 0xd87   :  { %1437 = vsyncadd [#allocation4], 4294966784 }
 0xd88   :  { %1144 = vsyncpa [#allocation4], 1 }

</bundles_post_ra>
